<compile_context>
chip_gen: v6e
topology: v6e:2x2x1
jax: 0.10.0
libtpu: 0.0.40
codegen_flags: <defaults>
</compile_context>

<pallas_src>
import functools

import jax
import jax.numpy as jnp
from jax.experimental import pallas as pl
from jax.experimental.pallas import tpu as pltpu

_LANE = 128      # TPU lane width
_SUBLANE = 8     # TPU sublane width
_MAX_TILE_B = 1024        # 512-1024 is the measured HBM-roofline sweet spot
_MIN_TILE_B = 256
_TARGET_GRID_STEPS = 8    # keep >=2 (ideally 4-8) steps -> both v7x TCs busy


def _round_up(n, m):
    return ((n + m - 1) // m) * m


def _mlp_kernel(x_ref, w1_ref, b1_ref, w2_ref, b2_ref, o_ref, *, use_bf16_mxu):
    tile_b, obs_dim = x_ref.shape
    hidden = w1_ref.shape[1]
    a_real = o_ref.shape[1]          # true (un-padded) action_dim

    x = x_ref[...].astype(jnp.float32)
    w1 = w1_ref[...].astype(jnp.float32)

    # Layer 1: contraction dim (obs_dim) is tiny, so use unrolled VPU FMAs
    # (outer-product accumulation) instead of an underfilled MXU matmul.
    h = jnp.broadcast_to(b1_ref[...].astype(jnp.float32), (tile_b, hidden))
    for k in range(obs_dim):         # static Python unroll, obs_dim is small
        h = h + x[:, k:k + 1] * w1[k:k + 1, :]
    h = jnp.maximum(h, 0.0)          # ReLU

    # Layer 2: (tile_b, H) @ (H, A_pad) on the MXU.  The N dimension stays
    # lane-padded (A_pad = 128) for a full MXU tile, but only the real action
    # columns are written back to HBM below.
    if use_bf16_mxu:
        h_in = h.astype(jnp.bfloat16)
        w2 = w2_ref[...].astype(jnp.bfloat16)
    else:
        h_in = h
        w2 = w2_ref[...].astype(jnp.float32)
    logits = jnp.dot(h_in, w2, preferred_element_type=jnp.float32)
    logits = logits + b2_ref[...].astype(jnp.float32)

    # Store only the real action columns: ~64x less HBM writeback than storing
    # the padded 128-wide block (store is masked, but tiny).
    o_ref[...] = logits[:, :a_real].astype(o_ref.dtype)


def pad_policy_params(w2, b2):
    """Zero-pad the action dim of layer-2 params up to a lane multiple (128).

    Call ONCE outside the rollout loop so the padding is not re-materialised
    on every forward call.  The padded columns produce inert logits that are
    never written back to HBM by the kernel.
    """
    H, A = w2.shape
    A_pad = max(_LANE, _round_up(A, _LANE))
    b2 = b2.reshape(1, A)
    if A_pad == A:
        return w2, b2
    w2p = jnp.zeros((H, A_pad), w2.dtype).at[:, :A].set(w2)
    b2p = jnp.zeros((1, A_pad), b2.dtype).at[:, :A].set(b2)
    return w2p, b2p


def _choose_tile_b(batch):
    b8 = _round_up(max(batch, _SUBLANE), _SUBLANE)
    if b8 <= _MAX_TILE_B:
        return b8  # small batch: whole padded batch in one block
    # Large rollout batch: aim for ~8 grid steps (so "parallel" batch tiles can
    # shard across both TensorCores on v7x) with 256-1024 rows per tile.
    tile = _round_up(pl.cdiv(b8, _TARGET_GRID_STEPS), _SUBLANE)
    return max(_MIN_TILE_B, min(_MAX_TILE_B, tile))


def policy_network_forward(x, w1, b1, w2p, b2p, *, action_dim,
                           tile_b=None, use_bf16_mxu=False):
    """Forward pass of PolicyNetwork.

    x:   (B, obs_dim)
    w1:  (obs_dim, H), b1: (1, H) or (H,)
    w2p: (H, A_pad) lane-padded (see pad_policy_params), b2p: (1, A_pad)
    action_dim: true number of actions A (static under jit).
    Returns (B, A) logits.
    """
    B, obs_dim = x.shape
    H = w1.shape[1]
    A = int(action_dim)
    A_pad = w2p.shape[1]
    assert A_pad % _LANE == 0 and A <= A_pad, "pad params with pad_policy_params()"

    b1 = b1.reshape(1, H)

    # ---- batch tiling: sublane-aligned tile; pad batch to whole tiles.
    if tile_b is None:
        tile_b = _choose_tile_b(B)
    tile_b = _round_up(max(_SUBLANE, min(int(tile_b), _round_up(B, _SUBLANE))),
                       _SUBLANE)
    B_pad = _round_up(B, tile_b)
    xp = x if B_pad == B else jnp.zeros((B_pad, obs_dim), x.dtype).at[:B].set(x)

    grid = (B_pad // tile_b,)

    flops = 2 * B_pad * (obs_dim * H + H * A_pad)
    bytes_accessed = int(
        B_pad * obs_dim * jnp.dtype(x.dtype).itemsize      # x read
        + B_pad * A * jnp.dtype(x.dtype).itemsize           # real logits written
        + w1.size * jnp.dtype(w1.dtype).itemsize
        + b1.size * jnp.dtype(b1.dtype).itemsize
        + w2p.size * jnp.dtype(w2p.dtype).itemsize
        + b2p.size * jnp.dtype(b2p.dtype).itemsize)

    # Rough per-step VMEM need (double-buffered x/out tiles, resident params,
    # h/logits intermediates).  Only raise the scoped-VMEM limit above the
    # smallest default (v5e: 16 MiB) when needed; keep well under v7x's 64 MiB.
    vmem_est = 4 * (2 * tile_b * (obs_dim + A)
                    + 3 * tile_b * A_pad
                    + 2 * (obs_dim * H + H + H * A_pad + A_pad))
    vmem_limit = int(min(48 * 2**20, max(32 * 2**20, 2 * vmem_est)))

    kernel = functools.partial(_mlp_kernel, use_bf16_mxu=use_bf16_mxu)
    out = pl.pallas_call(
        kernel,
        out_shape=jax.ShapeDtypeStruct((B_pad, A), x.dtype),
        grid=grid,
        in_specs=[
            pl.BlockSpec((tile_b, obs_dim), lambda i: (i, 0)),  # x: batch-tiled
            pl.BlockSpec((obs_dim, H), lambda i: (0, 0)),       # weights/biases:
            pl.BlockSpec((1, H), lambda i: (0, 0)),             #  constant index_map
            pl.BlockSpec((H, A_pad), lambda i: (0, 0)),          #  -> VMEM-resident
            pl.BlockSpec((1, A_pad), lambda i: (0, 0)),
        ],
        out_specs=pl.BlockSpec((tile_b, A), lambda i: (i, 0)),
        compiler_params=pltpu.CompilerParams(
            dimension_semantics=("parallel",),   # batch tiles across TCs (v7x)
            vmem_limit_bytes=vmem_limit),
        cost_estimate=pl.CostEstimate(
            flops=flops, bytes_accessed=bytes_accessed, transcendentals=0),
    )(xp, w1, b1, w2p, b2p)

    return out if B_pad == B else out[:B]


def init_policy_params(key, obs_dim, hidden_size, action_dim, dtype=jnp.float32):
    """Deterministic init mimicking PyTorch nn.Linear (uniform +/- 1/sqrt(fan_in))."""
    k1, k2, k3, k4 = jax.random.split(key, 4)
    lim1 = 1.0 / jnp.sqrt(jnp.float32(obs_dim))
    lim2 = 1.0 / jnp.sqrt(jnp.float32(hidden_size))
    w1 = jax.random.uniform(k1, (obs_dim, hidden_size), dtype, -lim1, lim1)
    b1 = jax.random.uniform(k2, (1, hidden_size), dtype, -lim1, lim1)
    w2 = jax.random.uniform(k3, (hidden_size, action_dim), dtype, -lim2, lim2)
    b2 = jax.random.uniform(k4, (1, action_dim), dtype, -lim2, lim2)
    return w1, b1, w2, b2


def _ref(x, w1, b1, w2, b2):
    return jnp.maximum(x @ w1 + b1, 0.0) @ w2 + b2


if __name__ == "__main__":
    # CartPole-like spec: Box obs of dim 4, Discrete(2) actions, hidden_size=128.
    obs_dim, hidden_size, action_dim = 4, 128, 2

    key = jax.random.PRNGKey(0)
    kx, kp = jax.random.split(key)
    w1, b1, w2, b2 = init_policy_params(kp, obs_dim, hidden_size, action_dim)
    # Lane-pad layer-2 params ONCE (hoisted out of the per-call forward path).
    w2p, b2p = pad_policy_params(w2, b2)

    fwd = jax.jit(policy_network_forward,
                  static_argnames=("action_dim", "tile_b", "use_bf16_mxu"))

    # Medium batch: fits in a single 256-row block (grid=(1,)).
    x = jax.random.normal(kx, (256, obs_dim), dtype=jnp.float32)
    out = fwd(x, w1, b1, w2p, b2p, action_dim=action_dim)
    jax.block_until_ready(out)
    assert out.shape == (256, action_dim)
    assert jnp.allclose(out, _ref(x, w1, b1, w2, b2), atol=1e-5, rtol=1e-5)

    # Tiny / non-aligned batch (exercises batch padding, single 8-row block).
    x_small = x[:5]
    out_small = fwd(x_small, w1, b1, w2p, b2p, action_dim=action_dim)
    jax.block_until_ready(out_small)
    assert out_small.shape == (5, action_dim)
    assert jnp.allclose(out_small, _ref(x_small, w1, b1, w2, b2),
                        atol=1e-5, rtol=1e-5)

    # Large rollout batch: multi-step grid (320-row tiles, 8 parallel steps).
    x_big = jax.random.normal(jax.random.PRNGKey(1), (2500, obs_dim), jnp.float32)
    out_big = fwd(x_big, w1, b1, w2p, b2p, action_dim=action_dim)
    jax.block_until_ready(out_big)
    assert out_big.shape == (2500, action_dim)
    assert jnp.allclose(out_big, _ref(x_big, w1, b1, w2, b2),
                        atol=1e-5, rtol=1e-5)

    # Optional bf16-MXU path (f32 accumulation) -- looser tolerance vs f32 ref.
    out_bf16 = fwd(x_big, w1, b1, w2p, b2p, action_dim=action_dim,
                   use_bf16_mxu=True)
    jax.block_until_ready(out_bf16)
    assert jnp.allclose(out_bf16, _ref(x_big, w1, b1, w2, b2),
                        atol=5e-2, rtol=5e-2)

    print("KERNEL_OK")
</pallas_src>

<mosaic_0001>
module attributes {stable_mosaic.version = 11 : i64} {
  func.func @_mlp_kernel(%arg0: i32, %arg1: memref<256x4xf32, #tpu.memory_space<vmem>>, %arg2: memref<4x128xf32, #tpu.memory_space<vmem>>, %arg3: memref<1x128xf32, #tpu.memory_space<vmem>>, %arg4: memref<128x128xf32, #tpu.memory_space<vmem>>, %arg5: memref<1x128xf32, #tpu.memory_space<vmem>>, %arg6: memref<256x2xf32, #tpu.memory_space<vmem>>) attributes {dimension_semantics = [#tpu.dimension_semantics<parallel>], iteration_bounds = array<i64: 1>, scalar_prefetch = 0 : i64, scratch_operands = 0 : i64, tpu.core_type = #tpu.core_type<tc>, window_params = [{transform_indices = @transform_0, window_bounds = array<i64: 256, 4>}, {pipeline_mode = #tpu.pipeline_mode<synchronous>, transform_indices = @transform_1, window_bounds = array<i64: 4, 128>}, {pipeline_mode = #tpu.pipeline_mode<synchronous>, transform_indices = @transform_2, window_bounds = array<i64: 1, 128>}, {pipeline_mode = #tpu.pipeline_mode<synchronous>, transform_indices = @transform_3, window_bounds = array<i64: 128, 128>}, {pipeline_mode = #tpu.pipeline_mode<synchronous>, transform_indices = @transform_4, window_bounds = array<i64: 1, 128>}, {transform_indices = @transform_5, window_bounds = array<i64: 256, 2>}]} {
    %c0 = arith.constant 0 : index
    %c0_0 = arith.constant 0 : index
    %0 = vector.load %arg1[%c0, %c0_0] : memref<256x4xf32, #tpu.memory_space<vmem>>, vector<256x4xf32>
    %c0_1 = arith.constant 0 : index
    %c0_2 = arith.constant 0 : index
    %1 = vector.load %arg2[%c0_1, %c0_2] : memref<4x128xf32, #tpu.memory_space<vmem>>, vector<4x128xf32>
    %c0_3 = arith.constant 0 : index
    %c0_4 = arith.constant 0 : index
    %2 = vector.load %arg3[%c0_3, %c0_4] : memref<1x128xf32, #tpu.memory_space<vmem>>, vector<1x128xf32>
    %3 = vector.shape_cast %2 : vector<1x128xf32> to vector<1x128xf32>
    %4 = vector.broadcast %3 : vector<1x128xf32> to vector<256x128xf32>
    %5 = vector.extract_strided_slice %0 {offsets = [0, 0], sizes = [256, 1], strides = [1, 1]} : vector<256x4xf32> to vector<256x1xf32>
    %6 = vector.extract_strided_slice %1 {offsets = [0, 0], sizes = [1, 128], strides = [1, 1]} : vector<4x128xf32> to vector<1x128xf32>
    %7 = vector.broadcast %5 : vector<256x1xf32> to vector<256x128xf32>
    %8 = vector.broadcast %6 : vector<1x128xf32> to vector<256x128xf32>
    %9 = arith.mulf %7, %8 : vector<256x128xf32>
    %10 = arith.addf %4, %9 : vector<256x128xf32>
    %11 = vector.extract_strided_slice %0 {offsets = [0, 1], sizes = [256, 1], strides = [1, 1]} : vector<256x4xf32> to vector<256x1xf32>
    %12 = vector.extract_strided_slice %1 {offsets = [1, 0], sizes = [1, 128], strides = [1, 1]} : vector<4x128xf32> to vector<1x128xf32>
    %13 = vector.broadcast %11 : vector<256x1xf32> to vector<256x128xf32>
    %14 = vector.broadcast %12 : vector<1x128xf32> to vector<256x128xf32>
    %15 = arith.mulf %13, %14 : vector<256x128xf32>
    %16 = arith.addf %10, %15 : vector<256x128xf32>
    %17 = vector.extract_strided_slice %0 {offsets = [0, 2], sizes = [256, 1], strides = [1, 1]} : vector<256x4xf32> to vector<256x1xf32>
    %18 = vector.extract_strided_slice %1 {offsets = [2, 0], sizes = [1, 128], strides = [1, 1]} : vector<4x128xf32> to vector<1x128xf32>
    %19 = vector.broadcast %17 : vector<256x1xf32> to vector<256x128xf32>
    %20 = vector.broadcast %18 : vector<1x128xf32> to vector<256x128xf32>
    %21 = arith.mulf %19, %20 : vector<256x128xf32>
    %22 = arith.addf %16, %21 : vector<256x128xf32>
    %23 = vector.extract_strided_slice %0 {offsets = [0, 3], sizes = [256, 1], strides = [1, 1]} : vector<256x4xf32> to vector<256x1xf32>
    %24 = vector.extract_strided_slice %1 {offsets = [3, 0], sizes = [1, 128], strides = [1, 1]} : vector<4x128xf32> to vector<1x128xf32>
    %25 = vector.broadcast %23 : vector<256x1xf32> to vector<256x128xf32>
    %26 = vector.broadcast %24 : vector<1x128xf32> to vector<256x128xf32>
    %27 = arith.mulf %25, %26 : vector<256x128xf32>
    %28 = arith.addf %22, %27 : vector<256x128xf32>
    %cst = arith.constant 0.000000e+00 : f32
    %29 = vector.broadcast %cst : f32 to vector<256x128xf32>
    %30 = arith.maximumf %28, %29 : vector<256x128xf32>
    %c0_5 = arith.constant 0 : index
    %c0_6 = arith.constant 0 : index
    %31 = vector.load %arg4[%c0_5, %c0_6] : memref<128x128xf32, #tpu.memory_space<vmem>>, vector<128x128xf32>
    %cst_7 = arith.constant dense<0.000000e+00> : vector<256x128xf32>
    %32 = tpu.matmul %30, %31, %cst_7 {dimension_numbers = #tpu.dot_dimension_numbers<[1], [0], [0], [1], [0, 0, 1, 1], [], []>} : vector<256x128xf32>, vector<128x128xf32>, vector<256x128xf32> -> vector<256x128xf32>
    %c0_8 = arith.constant 0 : index
    %c0_9 = arith.constant 0 : index
    %33 = vector.load %arg5[%c0_8, %c0_9] : memref<1x128xf32, #tpu.memory_space<vmem>>, vector<1x128xf32>
    %34 = vector.broadcast %33 : vector<1x128xf32> to vector<256x128xf32>
    %35 = arith.addf %32, %34 : vector<256x128xf32>
    %36 = vector.extract_strided_slice %35 {offsets = [0, 0], sizes = [256, 2], strides = [1, 1]} : vector<256x128xf32> to vector<256x2xf32>
    %c0_10 = arith.constant 0 : index
    %c0_11 = arith.constant 0 : index
    %37 = vector.load %arg6[%c0_10, %c0_11] : memref<256x2xf32, #tpu.memory_space<vmem>>, vector<256x2xf32>
    tpu.vector_store %arg6[%c0_10, %c0_11], %36 {strides = array<i32>} : memref<256x2xf32, #tpu.memory_space<vmem>>, vector<256x2xf32>,
    return
  }
  func.func @transform_0(%arg0: i32) -> (i32, i32) {
    %c0_i32 = arith.constant 0 : i32
    %c0_i32_0 = arith.constant 0 : i32
    return %arg0, %c0_i32 : i32, i32
  }
  func.func @transform_1(%arg0: i32) -> (i32, i32) {
    %c0_i32 = arith.constant 0 : i32
    %c0_i32_0 = arith.constant 0 : i32
    %c0_i32_1 = arith.constant 0 : i32
    return %c0_i32, %c0_i32_0 : i32, i32
  }
  func.func @transform_2(%arg0: i32) -> (i32, i32) {
    %c0_i32 = arith.constant 0 : i32
    %c0_i32_0 = arith.constant 0 : i32
    %c0_i32_1 = arith.constant 0 : i32
    return %c0_i32, %c0_i32_0 : i32, i32
  }
  func.func @transform_3(%arg0: i32) -> (i32, i32) {
    %c0_i32 = arith.constant 0 : i32
    %c0_i32_0 = arith.constant 0 : i32
    %c0_i32_1 = arith.constant 0 : i32
    return %c0_i32, %c0_i32_0 : i32, i32
  }
  func.func @transform_4(%arg0: i32) -> (i32, i32) {
    %c0_i32 = arith.constant 0 : i32
    %c0_i32_0 = arith.constant 0 : i32
    %c0_i32_1 = arith.constant 0 : i32
    return %c0_i32, %c0_i32_0 : i32, i32
  }
  func.func @transform_5(%arg0: i32) -> (i32, i32) {
    %c0_i32 = arith.constant 0 : i32
    %c0_i32_0 = arith.constant 0 : i32
    return %arg0, %c0_i32 : i32, i32
  }
}

</mosaic_0001>

<bundles_post_ra>
// kernel: policy_network_forward.1
= control target key start
LH: loop header
LB: loop body
LE: loop exit
PB: predicated region body
PF: predicated region fallthrough
CT: control target
= control target key end

     0   :  { %v1396_v0 = vmov 0   ;;  %v2396_v33 = vmov 1   ;;  %v2394_v34 = vmov 2   ;;  %v2392_v35 = vmov 3   ;;  %s2386_s0 = inlined_call_operand.vmem [shape: f32[256,4], index: 0, kind: input, shape index: {}]   ;;  %s2387_s1 = inlined_call_operand.vmem [shape: f32[4,128], index: 1, kind: input, shape index: {}]   ;;  %s2388_s2 = inlined_call_operand.vmem [shape: f32[1,128], index: 2, kind: input, shape index: {}]   ;;  %s2389_s3 = inlined_call_operand.vmem [shape: f32[128,128], index: 3, kind: input, shape index: {}]   ;;  %s2390_s4 = inlined_call_operand.vmem [shape: f32[1,128], index: 4, kind: input, shape index: {}]   ;;  %s2391_s5 = inlined_call_operand.vmem [shape: f32[256,2], index: 5, kind: output, shape index: {}]  }
   0x1   :  { %1360 = vset.pattern.permute.xlu1 %v1396_v0  ;;  %1359 = vset.pattern.permute.xlu0 %v1396_v0  ;;  %v1433_v1 = vld [vmem:[%s2386_s0 + $0x10] sm:$0xff]  ;;  %v1438_v2 = vld [vmem:[%s2386_s0] sm:$0xff]  ;;  %v1445_v3 = vld [vmem:[%s2386_s0 + $0x18] sm:$0xff]  ;;  %v220_v36 = vlaneseq  ;;  %vm1156_vm0 = vcmask 15360  }
   0x2   :  { %72 = vperm.xlu1 %1360, %v1433_v1   ;;  %62 = vperm.xlu0 %1359, %v1438_v2   ;;  %v1450_v4 = vld [vmem:[%s2386_s0 + $0x8] sm:$0xff]  ;;  %v1462_v6 = vld [vmem:[%s2386_s0 + $0x20] sm:$0xff]  ;;  %v1469_v7 = vld [vmem:[%s2386_s0 + $0x38] sm:$0xff] }
   0x3   :  { %v1457_v5 = vld [vmem:[%s2386_s0 + $0x28] sm:$0xff]  ;;  %v1474_v8 = vld [vmem:[%s2386_s0 + $0x30] sm:$0xff]  ;;  %v1486_v10 = vld [vmem:[%s2386_s0 + $0x40] sm:$0xff]  ;;  %v1657_v39 = vshrl.u32 %v220_v36, 7 }
   0x4   :  { %v1481_v9 = vld [vmem:[%s2386_s0 + $0x48] sm:$0xff]  ;;  %v1493_v11 = vld [vmem:[%s2386_s0 + $0x58] sm:$0xff]  ;;  %v1498_v12 = vld [vmem:[%s2386_s0 + $0x50] sm:$0xff] }
   0x5   :  { %v1505_v13 = vld [vmem:[%s2386_s0 + $0x68] sm:$0xff]  ;;  %v1510_v14 = vld [vmem:[%s2386_s0 + $0x60] sm:$0xff]  ;;  %v35_v15 = vld [vmem:[%s2386_s0 + $0x78] sm:$0xff]  ;;  %v222_v42 = vsub.s32 0, %v1657_v39 }
   0x6   :  { %77 = vperm.xlu1 %1360, %v1445_v3   ;;  %67 = vperm.xlu0 %1359, %v1450_v4   ;;  %v1520_v16 = vld [vmem:[%s2386_s0 + $0x70] sm:$0xff]  ;;  %v1526_v17 = vld [vmem:[%s2386_s0 + $0x88] sm:$0xff]  ;;  %v1531_v18 = vld [vmem:[%s2386_s0 + $0x80] sm:$0xff] }
   0x7   :  { %v1538_v19 = vld [vmem:[%s2386_s0 + $0x98] sm:$0xff]  ;;  %v1543_v20 = vld [vmem:[%s2386_s0 + $0x90] sm:$0xff]  ;;  %v1550_v21 = vld [vmem:[%s2386_s0 + $0xa8] sm:$0xff] }
   0x8   :  { %v1555_v22 = vld [vmem:[%s2386_s0 + $0xa0] sm:$0xff]  ;;  %v1562_v23 = vld [vmem:[%s2386_s0 + $0xb8] sm:$0xff]  ;;  %v1567_v24 = vld [vmem:[%s2386_s0 + $0xb0] sm:$0xff] }
   0x9   :  { %v1574_v25 = vld [vmem:[%s2386_s0 + $0xc8] sm:$0xff]  ;;  %v1579_v26 = vld [vmem:[%s2386_s0 + $0xc0] sm:$0xff]  ;;  %v1586_v27 = vld [vmem:[%s2386_s0 + $0xd8] sm:$0xff] }
   0xa   :  { %87 = vperm.xlu1 %1360, %v1457_v5   ;;  %82 = vperm.xlu0 %1359, %v1462_v6   ;;  %v1591_v28 = vld [vmem:[%s2386_s0 + $0xd0] sm:$0xff]  ;;  %v1598_v29 = vld [vmem:[%s2386_s0 + $0xe8] sm:$0xff]  ;;  %v1603_v30 = vld [vmem:[%s2386_s0 + $0xe0] sm:$0xff] }
   0xb   :  { %v1610_v31 = vld [vmem:[%s2386_s0 + $0xf8] sm:$0xff]  ;;  %v1615_v32 = vld [vmem:[%s2386_s0 + $0xf0] sm:$0xff]  ;;  %v1670_v43 = vld [vmem:[%s2387_s1] sm:$0xf] }
   0xc   :  { %v1679_v46 = vrot.slane %v1670_v43, %v222_v42  ;;  %v1688_v51 = vld [vmem:[%s2388_s2] ss:$0 sm:$0xff]  ;;  %v923_v52 = vld [vmem:[%s2389_s3 + $0x78] sm:$0xff]  ;;  %v922_v57 = vld [vmem:[%s2389_s3 + $0x70] sm:$0xff] }
   0xd   :  { %1243 = vmatprep.subr.mxu0 %v923_v52  ;;  %1323 = vmatprep.subr.mxu1 %v923_v52  ;;  %v921_v60 = vld [vmem:[%s2389_s3 + $0x68] sm:$0xff]  ;;  %v919_v36 = vld [vmem:[%s2389_s3 + $0x58] sm:$0xff] }
   0xe   :  { %97 = vperm.xlu1 %1360, %v1469_v7   ;;  %92 = vperm.xlu0 %1359, %v1474_v8  }
   0xf   :  { %1244 = vmatpush3.msra.mxu0 %v923_v52  ;;  %1339 = vmatpush3.msra.mxu1 %v923_v52  ;;  %v918_v52 = vld [vmem:[%s2389_s3 + $0x50] sm:$0xff] }
  0x10   :  { %1245 = vmatprep.subr.mxu0 %v922_v57  ;;  %1324 = vmatprep.subr.mxu1 %v922_v57 }
  0x11   :  { %1246 = vmatpush3.msra.mxu0 %v922_v57  ;;  %1340 = vmatpush3.msra.mxu1 %v922_v57  ;;  %v917_v57 = vld [vmem:[%s2389_s3 + $0x48] sm:$0xff] }
  0x12   :  { %107 = vperm.xlu1 %1360, %v1481_v9   ;;  %102 = vperm.xlu0 %1359, %v1486_v10  }
  0x13   :  { %1247 = vmatprep.subr.mxu0 %v921_v60  ;;  %1325 = vmatprep.subr.mxu1 %v921_v60 }
  0x14   :  { %1248 = vmatpush3.msra.mxu0 %v921_v60  ;;  %1341 = vmatpush3.msra.mxu1 %v921_v60 }
  0x16   :  { %117 = vperm.xlu1 %1360, %v1493_v11   ;;  %112 = vperm.xlu0 %1359, %v1498_v12  }
  0x1a   :  { %127 = vperm.xlu1 %1360, %v1505_v13   ;;  %122 = vperm.xlu0 %1359, %v1510_v14  }
  0x1e   :  { %137 = vperm.xlu1 %1360, %v35_v15   ;;  %132 = vperm.xlu0 %1359, %v1520_v16  }
  0x22   :  { %147 = vperm.xlu1 %1360, %v1526_v17   ;;  %142 = vperm.xlu0 %1359, %v1531_v18  }
  0x26   :  { %157 = vperm.xlu1 %1360, %v1538_v19   ;;  %152 = vperm.xlu0 %1359, %v1543_v20  }
  0x2a   :  { %167 = vperm.xlu1 %1360, %v1550_v21   ;;  %162 = vperm.xlu0 %1359, %v1555_v22  }
  0x2e   :  { %177 = vperm.xlu1 %1360, %v1562_v23   ;;  %172 = vperm.xlu0 %1359, %v1567_v24  }
  0x32   :  { %187 = vperm.xlu1 %1360, %v1574_v25   ;;  %182 = vperm.xlu0 %1359, %v1579_v26  }
  0x36   :  { %197 = vperm.xlu1 %1360, %v1586_v27   ;;  %192 = vperm.xlu0 %1359, %v1591_v28  }
  0x3a   :  { %207 = vperm.xlu1 %1360, %v1598_v29   ;;  %202 = vperm.xlu0 %1359, %v1603_v30  }
  0x3e   :  { %217 = vperm.xlu1 %1360, %v1610_v31   ;;  %212 = vperm.xlu0 %1359, %v1615_v32  }
  0x42   :  { %1362 = vset.pattern.permute.xlu1 %v2396_v33  ;;  %1361 = vset.pattern.permute.xlu0 %v2396_v33 }
  0x43   :  { %293 = vperm.xlu1 %1362, %v1450_v4   ;;  %289 = vperm.xlu0 %1361, %v1438_v2  }
  0x47   :  { %297 = vperm.xlu1 %1362, %v1433_v1   ;;  %301 = vperm.xlu0 %1361, %v1445_v3  }
  0x4b   :  { %305 = vperm.xlu1 %1362, %v1462_v6   ;;  %309 = vperm.xlu0 %1361, %v1457_v5  }
  0x4f   :  { %313 = vperm.xlu1 %1362, %v1474_v8   ;;  %317 = vperm.xlu0 %1361, %v1469_v7  }
  0x53   :  { %321 = vperm.xlu1 %1362, %v1486_v10   ;;  %325 = vperm.xlu0 %1361, %v1481_v9  }
  0x57   :  { %329 = vperm.xlu1 %1362, %v1498_v12   ;;  %333 = vperm.xlu0 %1361, %v1493_v11  }
  0x5b   :  { %337 = vperm.xlu1 %1362, %v1510_v14   ;;  %341 = vperm.xlu0 %1361, %v1505_v13  }
  0x5f   :  { %345 = vperm.xlu1 %1362, %v1520_v16   ;;  %349 = vperm.xlu0 %1361, %v35_v15  }
  0x63   :  { %353 = vperm.xlu1 %1362, %v1531_v18   ;;  %357 = vperm.xlu0 %1361, %v1526_v17  }
  0x67   :  { %361 = vperm.xlu1 %1362, %v1543_v20   ;;  %365 = vperm.xlu0 %1361, %v1538_v19  }
  0x6b   :  { %369 = vperm.xlu1 %1362, %v1555_v22   ;;  %373 = vperm.xlu0 %1361, %v1550_v21  }
  0x6f   :  { %1363 = vset.pattern.permute.xlu1 %v2394_v34  ;;  %377 = vperm.xlu0 %1361, %v1567_v24  }
  0x70   :  { %485 = vperm.xlu1 %1363, %v1438_v2  }
  0x73   :  { %381 = vperm.xlu0 %1361, %v1562_v23  }
  0x74   :  { %489 = vperm.xlu1 %1363, %v1450_v4  }
  0x77   :  { %1369 = vset.pattern.permute.xlu0 %v2394_v34 }
  0x78   :  { %553 = vperm.xlu1 %1363, %v1526_v17   ;;  %549 = vperm.xlu0 %1369, %v1531_v18  }
  0x7c   :  { %1364 = vset.pattern.permute.xlu1 %v2392_v35  ;;  %557 = vperm.xlu0 %1369, %v1543_v20  }
  0x7d   :  { %v1652_v37 = vpop.permute.xlu1 %72  ;;  %745 = vperm.xlu1 %1364, %v1531_v18   ;;  %v1655_v38 = vpop.permute.xlu0 %62 }
  0x80   :  { %565 = vperm.xlu0 %1369, %v1555_v22  }
  0x81   :  { %v1660_v40 = vpop.permute.xlu1 %77  ;;  %685 = vperm.xlu1 %1364, %v1450_v4   ;;  %v1663_v41 = vpop.permute.xlu0 %67  ;;  %v920_v4 = vld [vmem:[%s2389_s3 + $0x60] sm:$0xff] }
  0x82   :  { %1249 = vmatprep.subr.mxu0 %v920_v4  ;;  %1326 = vmatprep.subr.mxu1 %v920_v4 }
  0x83   :  { %1250 = vmatpush3.msra.mxu0 %v920_v4  ;;  %1342 = vmatpush3.msra.mxu1 %v920_v4 }
  0x84   :  { %513 = vperm.xlu0 %1369, %v1469_v7   ;;  %1251 = vmatprep.subr.mxu0 %v919_v36 }
  0x85   :  { %v1672_v44 = vpop.permute.xlu1 %87  ;;  %1365 = vset.pattern.permute.xlu1 %v2394_v34  ;;  %v1675_v45 = vpop.permute.xlu0 %82  ;;  %1252 = vmatpush3.msra.mxu0 %v919_v36 }
  0x86   :  { %493 = vperm.xlu1 %1365, %v1433_v1   ;;  %1253 = vmatprep.subr.mxu0 %v918_v52 }
  0x87   :  { %1327 = vmatprep.subr.mxu1 %v919_v36  ;;  %1254 = vmatpush3.msra.mxu0 %v918_v52 }
  0x88   :  { %517 = vperm.xlu0 %1369, %v1486_v10   ;;  %1343 = vmatpush3.msra.mxu1 %v919_v36  ;;  %v915_v36 = vld [vmem:[%s2389_s3 + $0x38] sm:$0xff] }
  0x89   :  { %v98_v47 = vpop.permute.xlu1 %97  ;;  %v93_v48 = vpop.permute.xlu0 %92  ;;  %1255 = vmatprep.subr.mxu0 %v917_v57  ;;  %1328 = vmatprep.subr.mxu1 %v918_v52 }
  0x8a   :  { %v231_v49 = vmul.f32 %v1679_v46, %v98_v47  ;;  %497 = vperm.xlu1 %1365, %v1445_v3   ;;  %v230_v50 = vmul.f32 %v1679_v46, %v93_v48  ;;  %1256 = vmatpush3.msra.mxu0 %v917_v57 }
  0x8b   :  { %1344 = vmatpush3.msra.mxu1 %v918_v52 }
  0x8c   :  { %v1694_v53 = vadd.f32 %v1688_v51, %v231_v49  ;;  %v1697_v54 = vadd.f32 %v1688_v51, %v230_v50  ;;  %585 = vperm.xlu0 %1369, %v1574_v25   ;;  %1329 = vmatprep.subr.mxu1 %v917_v57 }
  0x8d   :  { %v108_v55 = vpop.permute.xlu1 %107  ;;  %v103_v56 = vpop.permute.xlu0 %102  ;;  %1345 = vmatpush3.msra.mxu1 %v917_v57  ;;  %v912_v57 = vld [vmem:[%s2389_s3 + $0x20] sm:$0xff] }
  0x8e   :  { %v233_v58 = vmul.f32 %v1679_v46, %v108_v55  ;;  %561 = vperm.xlu1 %1365, %v1538_v19   ;;  %v232_v59 = vmul.f32 %v1679_v46, %v103_v56 }
  0x90   :  { %v1710_v61 = vadd.f32 %v1688_v51, %v233_v58  ;;  %v1713_v62 = vadd.f32 %v1688_v51, %v232_v59  ;;  %525 = vperm.xlu0 %1369, %v1498_v12  }
  0x91   :  { %v118_v63 = vpop.permute.xlu1 %117  ;;  %v113_v0 = vpop.permute.xlu0 %112 }
  0x92   :  { %v235_v15 = vmul.f32 %v1679_v46, %v118_v63  ;;  %1366 = vset.pattern.permute.xlu1 %v2392_v35  ;;  %v234_v18 = vmul.f32 %v1679_v46, %v113_v0  ;;  %v916_v63 = vld [vmem:[%s2389_s3 + $0x40] sm:$0xff] }
  0x93   :  { %753 = vperm.xlu1 %1366, %v1543_v20   ;;  %1257 = vmatprep.subr.mxu0 %v916_v63 }
  0x94   :  { %v1727_v42 = vadd.f32 %v1688_v51, %v235_v15  ;;  %v1730_v47 = vadd.f32 %v1688_v51, %v234_v18  ;;  %593 = vperm.xlu0 %1369, %v1586_v27   ;;  %1258 = vmatpush3.msra.mxu0 %v916_v63 }
  0x95   :  { %v128_v48 = vpop.permute.xlu1 %127  ;;  %v123_v49 = vpop.permute.xlu0 %122  ;;  %1259 = vmatprep.subr.mxu0 %v915_v36  ;;  %1330 = vmatprep.subr.mxu1 %v916_v63 }
  0x96   :  { %v237_v20 = vmul.f32 %v1679_v46, %v128_v48  ;;  %v236_v50 = vmul.f32 %v1679_v46, %v123_v49  ;;  %v914_v48 = vld [vmem:[%s2389_s3 + $0x30] sm:$0xff]  ;;  %1260 = vmatpush3.msra.mxu0 %v915_v36  ;;  %1346 = vmatpush3.msra.mxu1 %v916_v63 }
  0x97   :  { %693 = vperm.xlu1 %1366, %v1445_v3   ;;  %1261 = vmatprep.subr.mxu0 %v914_v48 }
  0x98   :  { %v1740_v55 = vadd.f32 %v1688_v51, %v237_v20  ;;  %v1743_v56 = vadd.f32 %v1688_v51, %v236_v50  ;;  %533 = vperm.xlu0 %1369, %v1510_v14   ;;  %v913_v50 = vld [vmem:[%s2389_s3 + $0x28] sm:$0xff]  ;;  %1331 = vmatprep.subr.mxu1 %v915_v36 }
  0x99   :  { %v138_v58 = vpop.permute.xlu1 %137  ;;  %v133_v59 = vpop.permute.xlu0 %132  ;;  %1262 = vmatpush3.msra.mxu0 %v914_v48  ;;  %1347 = vmatpush3.msra.mxu1 %v915_v36 }
  0x9a   :  { %v239_v3 = vmul.f32 %v1679_v46, %v138_v58  ;;  %v238_v60 = vmul.f32 %v1679_v46, %v133_v59  ;;  %1263 = vmatprep.subr.mxu0 %v913_v50  ;;  %1332 = vmatprep.subr.mxu1 %v914_v48 }
  0x9b   :  { %1367 = vset.pattern.permute.xlu1 %v2394_v34  ;;  %1264 = vmatpush3.msra.mxu0 %v913_v50 }
  0x9c   :  { %v1756_v0 = vadd.f32 %v1688_v51, %v239_v3  ;;  %v1759_v4 = vadd.f32 %v1688_v51, %v238_v60  ;;  %501 = vperm.xlu1 %1367, %v1462_v6   ;;  %601 = vperm.xlu0 %1369, %v1598_v29   ;;  %v911_v3 = vld [vmem:[%s2389_s3 + $0x18] sm:$0xff] }
  0x9d   :  { %v1763_v15 = vpop.permute.xlu1 %147  ;;  %v1765_v18 = vpop.permute.xlu0 %142  ;;  %1348 = vmatpush3.msra.mxu1 %v914_v48  ;;  %1265 = vmatprep.subr.mxu0 %v912_v57 }
  0x9e   :  { %1333 = vmatprep.subr.mxu1 %v913_v50  ;;  %1266 = vmatpush3.msra.mxu0 %v912_v57 }
  0x9f   :  { %1349 = vmatpush3.msra.mxu1 %v913_v50  ;;  %1267 = vmatprep.subr.mxu0 %v911_v3  ;;  %v909_v50 = vld [vmem:[%s2389_s3 + $0x8] sm:$0xff] }
  0xa0   :  { %505 = vperm.xlu1 %1367, %v1457_v5   ;;  %541 = vperm.xlu0 %1369, %v1520_v16  }
  0xa1   :  { %v1775_v49 = vpop.permute.xlu1 %157  ;;  %v1777_v20 = vpop.permute.xlu0 %152  ;;  %1334 = vmatprep.subr.mxu1 %v912_v57  ;;  %1268 = vmatpush3.msra.mxu0 %v911_v3 }
  0xa2   :  { %1350 = vmatpush3.msra.mxu1 %v912_v57  ;;  %v908_v57 = vld [vmem:[%s2389_s3] sm:$0xff] }
  0xa3   :  { %1335 = vmatprep.subr.mxu1 %v911_v3 }
  0xa4   :  { %569 = vperm.xlu1 %1367, %v1550_v21   ;;  %609 = vperm.xlu0 %1369, %v1610_v31  }
  0xa5   :  { %v1784_v16 = vpop.permute.xlu1 %167  ;;  %v1786_v52 = vpop.permute.xlu0 %162  ;;  %1351 = vmatpush3.msra.mxu1 %v911_v3 }
  0xa8   :  { %1368 = vset.pattern.permute.xlu1 %v2392_v35  ;;  %1391 = vset.pattern.permute.xlu0 %v2392_v35 }
  0xa9   :  { %v178_v58 = vpop.permute.xlu1 %177  ;;  %697 = vperm.xlu1 %1368, %v1462_v6   ;;  %681 = vperm.xlu0 %1391, %v1438_v2   ;;  %v173_v59 = vpop.permute.xlu0 %172  ;;  %v910_v2 = vld [vmem:[%s2389_s3 + $0x10] sm:$0xff] }
  0xaa   :  { %v247_v60 = vmul.f32 %v1679_v46, %v178_v58  ;;  %v246_v63 = vmul.f32 %v1679_v46, %v173_v59  ;;  %1269 = vmatprep.subr.mxu0 %v910_v2  ;;  %1336 = vmatprep.subr.mxu1 %v910_v2 }
  0xab   :  { %1270 = vmatpush3.msra.mxu0 %v910_v2  ;;  %1352 = vmatpush3.msra.mxu1 %v910_v2 }
  0xac   :  { %v1801_v36 = vadd.f32 %v1688_v51, %v247_v60  ;;  %v1804_v6 = vadd.f32 %v1688_v51, %v246_v63  ;;  %1271 = vmatprep.subr.mxu0 %v909_v50  ;;  %1337 = vmatprep.subr.mxu1 %v909_v50 }
  0xad   :  { %v188_v35 = vpop.permute.xlu1 %187  ;;  %761 = vperm.xlu1 %1368, %v1555_v22   ;;  %749 = vperm.xlu0 %1391, %v1526_v17   ;;  %v183_v48 = vpop.permute.xlu0 %182 }
  0xae   :  { %v249_v58 = vmul.f32 %v1679_v46, %v188_v35  ;;  %v248_v59 = vmul.f32 %v1679_v46, %v183_v48  ;;  %1272 = vmatpush3.msra.mxu0 %v909_v50  ;;  %1353 = vmatpush3.msra.mxu1 %v909_v50 }
  0xaf   :  { %1273 = vmatprep.subr.mxu0 %v908_v57  ;;  %1338 = vmatprep.subr.mxu1 %v908_v57 }
  0xb0   :  { %v1817_v60 = vadd.f32 %v1688_v51, %v249_v58  ;;  %v1820_v22 = vadd.f32 %v1688_v51, %v248_v59  ;;  %1274 = vmatpush3.msra.mxu0 %v908_v57  ;;  %1354 = vmatpush3.msra.mxu1 %v908_v57 }
  0xb1   :  { %v198_v17 = vpop.permute.xlu1 %197  ;;  %701 = vperm.xlu1 %1368, %v1457_v5   ;;  %689 = vperm.xlu0 %1391, %v1433_v1   ;;  %v193_v35 = vpop.permute.xlu0 %192 }
  0xb2   :  { %2398 = vst [vmem:[#allocation2_spill] sm:$0xff] %v1817_v60  ;;  %2399 = vst [vmem:[#allocation3_spill] sm:$0xff] %v1820_v22  ;;  %v251_v63 = vmul.f32 %v1679_v46, %v198_v17  ;;  %v250_v48 = vmul.f32 %v1679_v46, %v193_v35 }
  0xb4   :  { %v1830_v58 = vadd.f32 %v1688_v51, %v251_v63  ;;  %v1833_v5 = vadd.f32 %v1688_v51, %v250_v48 }
  0xb5   :  { %v208_v1 = vpop.permute.xlu1 %207  ;;  %1370 = vset.pattern.permute.xlu1 %v2394_v34  ;;  %757 = vperm.xlu0 %1391, %v1538_v19   ;;  %v203_v59 = vpop.permute.xlu0 %202 }
  0xb6   :  { %2400 = vst [vmem:[#allocation4_spill] sm:$0xff] %v1830_v58  ;;  %2401 = vst [vmem:[#allocation5_spill] sm:$0xff] %v1833_v5  ;;  %v253_v17 = vmul.f32 %v1679_v46, %v208_v1  ;;  %509 = vperm.xlu1 %1370, %v1474_v8   ;;  %v252_v3 = vmul.f32 %v1679_v46, %v203_v59 }
  0xb8   :  { %v1841_v35 = vadd.f32 %v1688_v51, %v253_v17  ;;  %v1844_v2 = vadd.f32 %v1688_v51, %v252_v3 }
  0xb9   :  { %v218_v63 = vpop.permute.xlu1 %217  ;;  %765 = vperm.xlu0 %1391, %v1550_v21   ;;  %v213_v19 = vpop.permute.xlu0 %212 }
  0xba   :  { %2402 = vst [vmem:[#allocation6_spill] sm:$0xff] %v1841_v35  ;;  %2403 = vst [vmem:[#allocation7_spill] sm:$0xff] %v1844_v2  ;;  %v255_v48 = vmul.f32 %v1679_v46, %v218_v63  ;;  %573 = vperm.xlu1 %1370, %v1567_v24   ;;  %v254_v1 = vmul.f32 %v1679_v46, %v213_v19  ;;  %v418_v63 = vsub.s32 1, %v1657_v39 }
  0xbc   :  { %v1851_v50 = vadd.f32 %v1688_v51, %v255_v48  ;;  %v1854_v59 = vadd.f32 %v1688_v51, %v254_v1  ;;  %v2406_v48 = vmov 3  }
  0xbd   :  { %705 = vperm.xlu0 %1391, %v1474_v8  }
  0xbe   :  { %2404 = vst [vmem:[#allocation8_spill] sm:$0xff] %v1851_v50  ;;  %2405 = vst [vmem:[#allocation9_spill] sm:$0xff] %v1854_v59  ;;  %v1857_v17 = vpop.permute.xlu1 %293  ;;  %577 = vperm.xlu1 %1370, %v1562_v23   ;;  %v1860_v21 = vpop.permute.xlu0 %289  ;;  %v2407_v59 = vmov 1  }
  0xc1   :  { %709 = vperm.xlu0 %1391, %v1469_v7   ;;  %v1878_v7 = vrot.slane %v1670_v43, %v418_v63 }
  0xc2   :  { %v1863_v57 = vpop.permute.xlu1 %297  ;;  %1371 = vset.pattern.permute.xlu1 %v2396_v33  ;;  %v1866_v3 = vpop.permute.xlu0 %301 }
  0xc3   :  { %385 = vperm.xlu1 %1371, %v1579_v26  }
  0xc5   :  { %713 = vperm.xlu0 %1391, %v1486_v10  }
  0xc6   :  { %v1871_v8 = vpop.permute.xlu1 %305  ;;  %v1873_v19 = vpop.permute.xlu0 %309 }
  0xc7   :  { %1372 = vset.pattern.permute.xlu1 %v2406_v48 }
  0xc8   :  { %769 = vperm.xlu1 %1372, %v1567_v24  }
  0xc9   :  { %717 = vperm.xlu0 %1391, %v1481_v9  }
  0xca   :  { %v1881_v1 = vpop.permute.xlu1 %313  ;;  %v318_v34 = vpop.permute.xlu0 %317 }
  0xcb   :  { %v427_v33 = vmul.f32 %v1878_v7, %v318_v34 }
  0xcc   :  { %1373 = vset.pattern.permute.xlu1 %v2407_v59 }
  0xcd   :  { %v1886_v10 = vadd.f32 %v427_v33, %v1694_v53  ;;  %389 = vperm.xlu1 %1373, %v1574_v25   ;;  %721 = vperm.xlu0 %1391, %v1498_v12  }
  0xce   :  { %v1890_v24 = vpop.permute.xlu1 %321  ;;  %v326_v63 = vpop.permute.xlu0 %325 }
  0xcf   :  { %v429_v50 = vmul.f32 %v1878_v7, %v326_v63 }
  0xd1   :  { %v1894_v2 = vadd.f32 %v429_v50, %v1710_v61  ;;  %1374 = vset.pattern.permute.xlu1 %v2406_v48  ;;  %725 = vperm.xlu0 %1391, %v1493_v11   ;;  %v2410_v61 = vmov 2  }
  0xd2   :  { %v1898_v34 = vpop.permute.xlu1 %329  ;;  %773 = vperm.xlu1 %1374, %v1562_v23   ;;  %v334_v33 = vpop.permute.xlu0 %333 }
  0xd3   :  { %2408 = vst [vmem:[#allocation10_spill] sm:$0xff] %v1894_v2  ;;  %v431_v53 = vmul.f32 %v1878_v7, %v334_v33 }
  0xd5   :  { %v1903_v12 = vadd.f32 %v431_v53, %v1727_v42  ;;  %729 = vperm.xlu0 %1391, %v1510_v14  }
  0xd6   :  { %v1906_v63 = vpop.permute.xlu1 %337  ;;  %1375 = vset.pattern.permute.xlu1 %v2410_v61  ;;  %v342_v50 = vpop.permute.xlu0 %341 }
  0xd7   :  { %2409 = vst [vmem:[#allocation11_spill] sm:$0xff] %v1903_v12  ;;  %v433_v35 = vmul.f32 %v1878_v7, %v342_v50  ;;  %581 = vperm.xlu1 %1375, %v1579_v26  }
  0xd9   :  { %v1912_v5 = vadd.f32 %v433_v35, %v1740_v55  ;;  %733 = vperm.xlu0 %1391, %v1505_v13   ;;  %v242_v55 = vmul.f32 %v1679_v46, %v1777_v20 }
  0xda   :  { %v1915_v23 = vpop.permute.xlu1 %345  ;;  %v350_v42 = vpop.permute.xlu0 %349 }
  0xdb   :  { %2411 = vst [vmem:[#allocation12_spill] sm:$0xff] %v1912_v5  ;;  %v435_v33 = vmul.f32 %v1878_v7, %v350_v42  ;;  %521 = vperm.xlu1 %1375, %v1481_v9   ;;  %v274_v9 = vadd.f32 %v1688_v51, %v242_v55 }
  0xdd   :  { %v1920_v14 = vadd.f32 %v435_v33, %v1756_v0  ;;  %801 = vperm.xlu0 %1391, %v1615_v32   ;;  %v244_v0 = vmul.f32 %v1679_v46, %v1786_v52 }
  0xde   :  { %v354_v53 = vpop.permute.xlu1 %353  ;;  %v1923_v50 = vpop.permute.xlu0 %357 }
  0xdf   :  { %2412 = vst [vmem:[#allocation13_spill] sm:$0xff] %v1920_v14  ;;  %1376 = vset.pattern.permute.xlu1 %v2407_v59  ;;  %v276_v12 = vadd.f32 %v1688_v51, %v244_v0  ;;  %v240_v0 = vmul.f32 %v1679_v46, %v1765_v18 }
  0xe0   :  { %393 = vperm.xlu1 %1376, %v1591_v28  }
  0xe2   :  { %v362_v35 = vpop.permute.xlu1 %361  ;;  %v1929_v5 = vpop.permute.xlu0 %365 }
  0xe3   :  { %v438_v42 = vmul.f32 %v1878_v7, %v362_v35 }
  0xe4   :  { %1377 = vset.pattern.permute.xlu1 %v2406_v48 }
  0xe5   :  { %v1936_v33 = vadd.f32 %v438_v42, %v274_v9  ;;  %777 = vperm.xlu1 %1377, %v1579_v26  }
  0xe6   :  { %v370_v20 = vpop.permute.xlu1 %369  ;;  %v1939_v14 = vpop.permute.xlu0 %373 }
  0xe7   :  { %v440_v58 = vmul.f32 %v1878_v7, %v370_v20 }
  0xe9   :  { %v1943_v22 = vadd.f32 %v440_v58, %v276_v12  ;;  %1378 = vset.pattern.permute.xlu1 %v2407_v59  ;;  %v614_v58 = vsub.s32 2, %v1657_v39 }
  0xea   :  { %397 = vperm.xlu1 %1378, %v1586_v27   ;;  %v378_v52 = vpop.permute.xlu0 %377 }
  0xeb   :  { %v442_v55 = vmul.f32 %v1878_v7, %v378_v52  ;;  %v1948_v35 = vpop.permute.xlu1 %485  ;;  %v272_v52 = vadd.f32 %v1688_v51, %v240_v0  ;;  %v1968_v2 = vrot.slane %v1670_v43, %v614_v58 }
  0xed   :  { %v1951_v26 = vadd.f32 %v442_v55, %v1804_v6  ;;  %v810_v6 = vsub.s32 3, %v1657_v39  ;;  %v436_v55 = vmul.f32 %v1878_v7, %v354_v53 }
  0xee   :  { %1379 = vset.pattern.permute.xlu1 %v2406_v48  ;;  %v382_v9 = vpop.permute.xlu0 %381 }
  0xef   :  { %2413 = vst [vmem:[#allocation14_spill] sm:$0xff] %v1951_v26  ;;  %v443_v12 = vmul.f32 %v1878_v7, %v382_v9  ;;  %781 = vperm.xlu1 %1379, %v1574_v25   ;;  %v1959_v42 = vpop.permute.xlu1 %489  ;;  %v468_v39 = vadd.f32 %v436_v55, %v272_v52 }
  0xf1   :  { %v1962_v20 = vadd.f32 %v443_v12, %v1801_v36  ;;  %v1976_v36 = vrot.slane %v1670_v43, %v810_v6 }
  0xf3   :  { %2414 = vst [vmem:[#allocation15_spill] sm:$0xff] %v1962_v20  ;;  %1380 = vset.pattern.permute.xlu1 %v2410_v61  ;;  %v1971_v18 = vpop.permute.xlu1 %553  ;;  %v550_v9 = vpop.permute.xlu0 %549 }
  0xf4   :  { %589 = vperm.xlu1 %1380, %v1591_v28   ;;  %v632_v25 = vmul.f32 %v1968_v2, %v550_v9 }
  0xf6   :  { %v664_v58 = vadd.f32 %v632_v25, %v468_v39 }
  0xf7   :  { %v1978_v12 = vpop.permute.xlu0 %557 }
  0xf8   :  { %529 = vperm.xlu1 %1380, %v1493_v11   ;;  %v746_v53 = vpop.permute.xlu1 %745 }
  0xf9   :  { %v828_v0 = vmul.f32 %v1976_v36, %v746_v53 }
  0xfb   :  { %v1982_v20 = vpop.permute.xlu0 %565  ;;  %v860_v60 = vadd.f32 %v828_v0, %v664_v58 }
  0xfc   :  { %1381 = vset.pattern.permute.xlu1 %v2407_v59  ;;  %v1985_v26 = vpop.permute.xlu1 %685 }
  0xfd   :  { %401 = vperm.xlu1 %1381, %v1603_v30   ;;  %v892_v43 = vmax.f32 %v860_v60, 0.0  ;;  %v430_v60 = vmul.f32 %v1878_v7, %v1898_v34  ;;  %v432_v34 = vmul.f32 %v1878_v7, %v1906_v63  ;;  %v434_v63 = vmul.f32 %v1878_v7, %v1915_v23 }
  0xfe   :  { %v226_v23 = vmul.f32 %v1679_v46, %v1652_v37  ;;  %v228_v37 = vmul.f32 %v1679_v46, %v1675_v45  ;;  %v243_v45 = vmul.f32 %v1679_v46, %v1775_v49  ;;  %v437_v49 = vmul.f32 %v1878_v7, %v1923_v50 }
  0xff   :  { %1299 = vmatprep.mubr.f32.mxu1 %v892_v43  ;;  %v1988_v6 = vpop.permute.xlu0 %513  ;;  %v633_v50 = vmul.f32 %v1968_v2, %v1971_v18 }
 0x101   :  { %1382 = vset.pattern.permute.xlu1 %v2406_v48  ;;  %v1991_v11 = vpop.permute.xlu1 %493 }
 0x102   :  { %785 = vperm.xlu1 %1382, %v1591_v28   ;;  %v462_v28 = vadd.f32 %v430_v60, %v1730_v47  ;;  %v464_v60 = vadd.f32 %v432_v34, %v1743_v56  ;;  %v224_v56 = vmul.f32 %v1679_v46, %v1655_v38  ;;  %v421_v38 = vmul.f32 %v1878_v7, %v1857_v17 }
 0x103   :  { %v1994_v52 = vpop.permute.xlu0 %517  ;;  %v241_v17 = vmul.f32 %v1679_v46, %v1763_v15  ;;  %v260_v15 = vadd.f32 %v1688_v51, %v228_v37 }
 0x105   :  { %v1996_v55 = vpop.permute.xlu1 %497 }
 0x106   :  { %1383 = vset.pattern.permute.xlu1 %v2407_v59 }
 0x107   :  { %405 = vperm.xlu1 %1383, %v1598_v29   ;;  %v2000_v9 = vpop.permute.xlu0 %585 }
 0x108   :  { %2415 = vst [vmem:[#allocation16_spill] sm:$0xff] %v2000_v9 }
 0x109   :  { %v2004_v25 = vpop.permute.xlu1 %561 }
 0x10b   :  { %1384 = vset.pattern.permute.xlu1 %v2406_v48  ;;  %v526_v39 = vpop.permute.xlu0 %525 }
 0x10c   :  { %v626_v53 = vmul.f32 %v1968_v2, %v526_v39  ;;  %789 = vperm.xlu1 %1384, %v1586_v27  }
 0x10e   :  { %v2010_v0 = vadd.f32 %v626_v53, %v462_v28  ;;  %v2012_v58 = vpop.permute.xlu1 %753 }
 0x10f   :  { %v2014_v43 = vpop.permute.xlu0 %593 }
 0x110   :  { %2416 = vst [vmem:[#allocation17_spill] sm:$0xff] %v2014_v43  ;;  %1385 = vset.pattern.permute.xlu1 %v2410_v61  ;;  %v225_v43 = vmul.f32 %v1679_v46, %v1663_v41 }
 0x111   :  { %597 = vperm.xlu1 %1385, %v1603_v30  }
 0x112   :  { %v2020_v9 = vpop.permute.xlu1 %693  ;;  %v257_v41 = vadd.f32 %v1688_v51, %v225_v43 }
 0x113   :  { %v534_v47 = vpop.permute.xlu0 %533 }
 0x114   :  { %v628_v27 = vmul.f32 %v1968_v2, %v534_v47  ;;  %v466_v47 = vadd.f32 %v434_v63, %v1759_v4  ;;  %v256_v4 = vadd.f32 %v1688_v51, %v224_v56  ;;  %v617_v63 = vmul.f32 %v1968_v2, %v1959_v42 }
 0x115   :  { %537 = vperm.xlu1 %1385, %v1505_v13   ;;  %v258_v56 = vadd.f32 %v1688_v51, %v226_v23  ;;  %v422_v42 = vmul.f32 %v1878_v7, %v1863_v57  ;;  %v275_v57 = vadd.f32 %v1688_v51, %v243_v45 }
 0x116   :  { %v2025_v39 = vadd.f32 %v628_v27, %v464_v60  ;;  %v227_v27 = vmul.f32 %v1679_v46, %v1660_v40  ;;  %v420_v40 = vmul.f32 %v1878_v7, %v1860_v21  ;;  %v616_v21 = vmul.f32 %v1968_v2, %v1948_v35 }
 0x117   :  { %v2027_v28 = vpop.permute.xlu1 %501  ;;  %v2029_v53 = vpop.permute.xlu0 %601  ;;  %v273_v35 = vadd.f32 %v1688_v51, %v241_v17 }
 0x118   :  { %2417 = vst [vmem:[#allocation18_spill] sm:$0xff] %v2025_v39  ;;  %2418 = vst [vmem:[#allocation19_spill] sm:$0xff] %v2029_v53  ;;  %v229_v53 = vmul.f32 %v1679_v46, %v1672_v44 }
 0x119   :  { %1386 = vset.pattern.permute.xlu1 %v2407_v59  ;;  %v469_v17 = vadd.f32 %v437_v49, %v273_v35 }
 0x11a   :  { %409 = vperm.xlu1 %1386, %v1615_v32  }
 0x11b   :  { %v2039_v13 = vpop.permute.xlu1 %505  ;;  %v542_v34 = vpop.permute.xlu0 %541 }
 0x11c   :  { %v630_v60 = vmul.f32 %v1968_v2, %v542_v34  ;;  %v261_v34 = vadd.f32 %v1688_v51, %v229_v53  ;;  %v423_v53 = vmul.f32 %v1878_v7, %v1866_v3  ;;  %v424_v3 = vmul.f32 %v1878_v7, %v1871_v8 }
 0x11e   :  { %v2052_v39 = vadd.f32 %v630_v60, %v466_v47  ;;  %1387 = vset.pattern.permute.xlu1 %v2406_v48  ;;  %v453_v47 = vadd.f32 %v421_v38, %v257_v41  ;;  %v813_v60 = vmul.f32 %v1976_v36, %v1985_v26  ;;  %v634_v26 = vmul.f32 %v1968_v2, %v1978_v12 }
 0x11f   :  { %793 = vperm.xlu1 %1387, %v1603_v30   ;;  %v2061_v43 = vpop.permute.xlu1 %569  ;;  %v2063_v44 = vpop.permute.xlu0 %609  ;;  %v259_v30 = vadd.f32 %v1688_v51, %v227_v27  ;;  %v454_v12 = vadd.f32 %v422_v42, %v258_v56  ;;  %v620_v56 = vmul.f32 %v1968_v2, %v2027_v28  ;;  %v636_v28 = vmul.f32 %v1968_v2, %v1982_v20 }
 0x120   :  { %2419 = vst [vmem:[#allocation20_spill] sm:$0xff] %v2052_v39  ;;  %v452_v39 = vadd.f32 %v420_v40, %v256_v4  ;;  %v649_v23 = vadd.f32 %v617_v63, %v453_v47  ;;  %v245_v4 = vmul.f32 %v1679_v46, %v1784_v16  ;;  %v425_v40 = vmul.f32 %v1878_v7, %v1873_v19 }
 0x121   :  { %v455_v18 = vadd.f32 %v423_v53, %v259_v30  ;;  %v666_v45 = vadd.f32 %v634_v26, %v1936_v33  ;;  %v619_v46 = vmul.f32 %v1968_v2, %v1996_v55  ;;  %v456_v33 = vadd.f32 %v424_v3, %v260_v15 }
 0x122   :  { %v648_v38 = vadd.f32 %v616_v21, %v452_v39  ;;  %v845_v37 = vadd.f32 %v813_v60, %v649_v23  ;;  %v618_v39 = vmul.f32 %v1968_v2, %v1991_v11  ;;  %v815_v11 = vmul.f32 %v1976_v36, %v2020_v9 }
 0x123   :  { %1388 = vset.pattern.permute.xlu1 %v2407_v59  ;;  %v457_v55 = vadd.f32 %v425_v40, %v261_v34  ;;  %v439_v60 = vmul.f32 %v1878_v7, %v1929_v5  ;;  %v621_v15 = vmul.f32 %v1968_v2, %v2039_v13  ;;  %v635_v9 = vmul.f32 %v1968_v2, %v2004_v25 }
 0x124   :  { %413 = vperm.xlu1 %1388, %v1610_v31   ;;  %v698_v27 = vpop.permute.xlu1 %697  ;;  %v682_v41 = vpop.permute.xlu0 %681  ;;  %v830_v31 = vmul.f32 %v1976_v36, %v2012_v58  ;;  %v665_v58 = vadd.f32 %v633_v50, %v469_v17  ;;  %v877_v30 = vmax.f32 %v845_v37, 0.0  ;;  %v650_v35 = vadd.f32 %v618_v39, %v454_v12 }
 0x125   :  { %v812_v59 = vmul.f32 %v1976_v36, %v682_v41  ;;  %v816_v42 = vmul.f32 %v1976_v36, %v698_v27  ;;  %v652_v34 = vadd.f32 %v620_v56, %v456_v33  ;;  %v471_v13 = vadd.f32 %v439_v60, %v275_v57 }
 0x126   :  { %v862_v47 = vadd.f32 %v830_v31, %v666_v45  ;;  %v277_v3 = vadd.f32 %v1688_v51, %v245_v4  ;;  %v668_v37 = vadd.f32 %v636_v28, %v1943_v22  ;;  %v637_v40 = vmul.f32 %v1968_v2, %v2061_v43  ;;  %v1393_v51 = vld [vmem:[%s2386_s0 + $0x78] sm:$0xff] }
 0x127   :  { %v844_v63 = vadd.f32 %v812_v59, %v648_v38  ;;  %v441_v59 = vmul.f32 %v1878_v7, %v1939_v14  ;;  %v848_v38 = vadd.f32 %v816_v42, %v652_v34  ;;  %v667_v12 = vadd.f32 %v635_v9, %v471_v13 }
 0x128   :  { %1389 = vset.pattern.permute.xlu1 %v2406_v48  ;;  %v762_v16 = vpop.permute.xlu1 %761  ;;  %v750_v8 = vpop.permute.xlu0 %749  ;;  %v894_v27 = vmax.f32 %v862_v47, 0.0  ;;  %v426_v22 = vmul.f32 %v1878_v7, %v1881_v1 }
 0x129   :  { %v829_v19 = vmul.f32 %v1976_v36, %v750_v8  ;;  %797 = vperm.xlu1 %1389, %v1598_v29   ;;  %v876_v21 = vmax.f32 %v844_v63, 0.0  ;;  %v651_v29 = vadd.f32 %v619_v46, %v455_v18  ;;  %v832_v20 = vmul.f32 %v1976_v36, %v762_v16 }
 0x12a   :  { %v473_v4 = vadd.f32 %v441_v59, %v277_v3  ;;  %v880_v45 = vmax.f32 %v848_v38, 0.0  ;;  %v458_v1 = vadd.f32 %v426_v22, %v1697_v54  ;;  %v428_v54 = vmul.f32 %v1878_v7, %v1890_v24  ;;  %v1395_v24 = vld [vmem:[%s2386_s0 + $0xf8] sm:$0xff]  ;;  %v2421_v3 = vld [vmem:[#allocation16_spill] sm:$0xff] }
 0x12b   :  { %v861_v49 = vadd.f32 %v829_v19, %v665_v58  ;;  %1275 = vmatprep.mubr.f32.mxu0 %v876_v21  ;;  %v847_v41 = vadd.f32 %v815_v11, %v651_v29  ;;  %v864_v14 = vadd.f32 %v832_v20, %v668_v37  ;;  %v623_v11 = vmul.f32 %v1968_v2, %v1988_v6  ;;  %v2420_v20 = vld [vmem:[#allocation14_spill] sm:$0xff] }
 0x12c   :  { %v702_v53 = vpop.permute.xlu1 %701  ;;  %1276 = vmatmul.mubr.f32.vlgmr.msra.gmra.mxu0 %v877_v30  ;;  %v690_v23 = vpop.permute.xlu0 %689  ;;  %v669_v46 = vadd.f32 %v637_v40, %v473_v4  ;;  %v1394_v30 = vld [vmem:[%s2386_s0 + $0x70] sm:$0xff]  ;;  %v624_v29 = vmul.f32 %v1968_v2, %v1994_v52  ;;  %v641_v37 = vmul.f32 %v1968_v2, %v2421_v3 }
 0x12d   :  { %v893_v5 = vmax.f32 %v861_v49, 0.0  ;;  %v814_v26 = vmul.f32 %v1976_v36, %v690_v23  ;;  %1390 = vset.pattern.permute.xlu1 %v2410_v61  ;;  %v817_v50 = vmul.f32 %v1976_v36, %v702_v53  ;;  %v653_v61 = vadd.f32 %v621_v15, %v457_v55 }
 0x12e   :  { %605 = vperm.xlu1 %1390, %v1615_v32   ;;  %v879_v63 = vmax.f32 %v847_v41, 0.0  ;;  %v896_v19 = vmax.f32 %v864_v14, 0.0  ;;  %v460_v23 = vadd.f32 %v428_v54, %v1713_v62 }
 0x12f   :  { %v846_v25 = vadd.f32 %v814_v26, %v650_v35  ;;  %1300 = vmatmul.mubr.f32.vlgmr.msra.gmra.mxu1 %v893_v5  ;;  %v849_v18 = vadd.f32 %v817_v50, %v653_v61  ;;  %v655_v35 = vadd.f32 %v623_v11, %v1886_v10  ;;  %v2425_v11 = vld [vmem:[#allocation3_spill] sm:$0xff] }
 0x130   :  { %1302 = vmatprep.mubr.f32.mxu1 %v894_v27  ;;  %v758_v31 = vpop.permute.xlu0 %757  ;;  %v656_v10 = vadd.f32 %v624_v29, %v460_v23 }
 0x131   :  { %v878_v17 = vmax.f32 %v846_v25, 0.0  ;;  %v831_v32 = vmul.f32 %v1976_v36, %v758_v31  ;;  %v510_v57 = vpop.permute.xlu1 %509  ;;  %v881_v21 = vmax.f32 %v849_v18, 0.0 }
 0x132   :  { %545 = vperm.xlu1 %1390, %v1393_v51   ;;  %v622_v8 = vmul.f32 %v1968_v2, %v510_v57 }
 0x133   :  { %v863_v39 = vadd.f32 %v831_v32, %v667_v12  ;;  %1278 = vmatprep.mubr.f32.mxu0 %v878_v17  ;;  %v2422_v12 = vld [vmem:[#allocation2_spill] sm:$0xff] }
 0x134   :  { %1279 = vmatmul.mubr.f32.gmra.mxu0 %v879_v63  ;;  %v766_v43 = vpop.permute.xlu0 %765  ;;  %v654_v55 = vadd.f32 %v622_v8, %v458_v1  ;;  %v2423_v63 = vld [vmem:[#allocation15_spill] sm:$0xff]  ;;  %v2424_v8 = vld [vmem:[#allocation10_spill] sm:$0xff] }
 0x135   :  { %v895_v16 = vmax.f32 %v863_v39, 0.0  ;;  %v833_v58 = vmul.f32 %v1976_v36, %v766_v43  ;;  %v574_v56 = vpop.permute.xlu1 %573  ;;  %1281 = vmatprep.mubr.f32.mxu0 %v880_v45 }
 0x136   :  { %1392 = vset.pattern.permute.xlu1 %v2406_v48  ;;  %v638_v34 = vmul.f32 %v1968_v2, %v574_v56 }
 0x137   :  { %v865_v33 = vadd.f32 %v833_v58, %v669_v46  ;;  %737 = vperm.xlu1 %1392, %v1394_v30   ;;  %1303 = vmatmul.mubr.f32.gmra.mxu1 %v895_v16 }
 0x138   :  { %1282 = vmatmul.mubr.f32.gmra.mxu0 %v881_v21  ;;  %1305 = vmatprep.mubr.f32.mxu1 %v896_v19  ;;  %v706_v47 = vpop.permute.xlu0 %705  ;;  %v670_v50 = vadd.f32 %v638_v34, %v2420_v20 }
 0x139   :  { %v897_v60 = vmax.f32 %v865_v33, 0.0  ;;  %v818_v42 = vmul.f32 %v1976_v36, %v706_v47  ;;  %v578_v48 = vpop.permute.xlu1 %577 }
 0x13a   :  { %v639_v31 = vmul.f32 %v1968_v2, %v578_v48 }
 0x13b   :  { %v850_v49 = vadd.f32 %v818_v42, %v654_v55  ;;  %741 = vperm.xlu1 %1392, %v1393_v51   ;;  %1306 = vmatmul.mubr.f32.gmra.mxu1 %v897_v60 }
 0x13c   :  { %v710_v28 = vpop.permute.xlu0 %709  ;;  %v671_v14 = vadd.f32 %v639_v31, %v2423_v63 }
 0x13d   :  { %v882_v15 = vmax.f32 %v850_v49, 0.0  ;;  %v819_v6 = vmul.f32 %v1976_v36, %v710_v28 }
 0x13e   :  { %v386_v53 = vpop.permute.xlu1 %385 }
 0x13f   :  { %v851_v9 = vadd.f32 %v819_v6, %v655_v35  ;;  %805 = vperm.xlu1 %1392, %v1395_v24   ;;  %1284 = vmatprep.mubr.f32.mxu0 %v882_v15  ;;  %v444_v19 = vmul.f32 %v1878_v7, %v386_v53  ;;  %v2426_v35 = vld [vmem:[#allocation17_spill] sm:$0xff]  ;;  %v2427_v15 = vld [vmem:[#allocation4_spill] sm:$0xff] }
 0x140   :  { %v714_v5 = vpop.permute.xlu0 %713  ;;  %v643_v29 = vmul.f32 %v1968_v2, %v2426_v35 }
 0x141   :  { %v883_v26 = vmax.f32 %v851_v9, 0.0  ;;  %v820_v52 = vmul.f32 %v1976_v36, %v714_v5  ;;  %v476_v55 = vadd.f32 %v444_v19, %v2425_v11 }
 0x143   :  { %v852_v27 = vadd.f32 %v820_v52, %v656_v10  ;;  %v770_v41 = vpop.permute.xlu1 %769  ;;  %1285 = vmatmul.mubr.f32.gmra.mxu0 %v883_v26 }
 0x144   :  { %v834_v62 = vmul.f32 %v1976_v36, %v770_v41  ;;  %v718_v17 = vpop.permute.xlu0 %717 }
 0x145   :  { %v884_v13 = vmax.f32 %v852_v27, 0.0  ;;  %v821_v46 = vmul.f32 %v1976_v36, %v718_v17 }
 0x146   :  { %v866_v59 = vadd.f32 %v834_v62, %v670_v50  ;;  %v2428_v50 = vld [vmem:[#allocation11_spill] sm:$0xff] }
 0x147   :  { %1287 = vmatprep.mubr.f32.mxu0 %v884_v13  ;;  %v2429_v13 = vld [vmem:[#allocation18_spill] sm:$0xff] }
 0x148   :  { %v898_v38 = vmax.f32 %v866_v59, 0.0  ;;  %v390_v25 = vpop.permute.xlu1 %389  ;;  %v722_v45 = vpop.permute.xlu0 %721 }
 0x149   :  { %v445_v61 = vmul.f32 %v1878_v7, %v390_v25  ;;  %v822_v39 = vmul.f32 %v1976_v36, %v722_v45  ;;  %v2432_v45 = vld [vmem:[#allocation6_spill] sm:$0xff] }
 0x14a   :  { %1308 = vmatprep.mubr.f32.mxu1 %v898_v38 }
 0x14b   :  { %v477_v40 = vadd.f32 %v445_v61, %v2422_v12  ;;  %v854_v56 = vadd.f32 %v822_v39, %v2010_v0  ;;  %v2430_v12 = vld [vmem:[#allocation5_spill] sm:$0xff] }
 0x14c   :  { %v726_v53 = vpop.permute.xlu0 %725 }
 0x14d   :  { %v774_v32 = vpop.permute.xlu1 %773  ;;  %v673_v57 = vadd.f32 %v641_v37, %v477_v40  ;;  %v886_v47 = vmax.f32 %v854_v56, 0.0  ;;  %v823_v41 = vmul.f32 %v1976_v36, %v726_v53 }
 0x14e   :  { %v835_v18 = vmul.f32 %v1976_v36, %v774_v32 }
 0x150   :  { %v867_v51 = vadd.f32 %v835_v18, %v671_v14  ;;  %v730_v26 = vpop.permute.xlu0 %729 }
 0x151   :  { %v824_v52 = vmul.f32 %v1976_v36, %v730_v26 }
 0x152   :  { %v899_v22 = vmax.f32 %v867_v51, 0.0  ;;  %v582_v4 = vpop.permute.xlu1 %581 }
 0x153   :  { %v640_v33 = vmul.f32 %v1968_v2, %v582_v4  ;;  %v856_v59 = vadd.f32 %v824_v52, %v2429_v13 }
 0x154   :  { %1309 = vmatmul.mubr.f32.gmra.mxu1 %v899_v22  ;;  %v2431_v22 = vld [vmem:[#allocation19_spill] sm:$0xff] }
 0x155   :  { %v672_v42 = vadd.f32 %v640_v33, %v476_v55  ;;  %v888_v31 = vmax.f32 %v856_v59, 0.0  ;;  %v645_v4 = vmul.f32 %v1968_v2, %v2431_v22 }
 0x156   :  { %v522_v43 = vpop.permute.xlu1 %521 }
 0x157   :  { %v625_v16 = vmul.f32 %v1968_v2, %v522_v43 }
 0x159   :  { %v657_v58 = vadd.f32 %v625_v16, %v2424_v8 }
 0x15b   :  { %v394_v21 = vpop.permute.xlu1 %393  ;;  %v853_v1 = vadd.f32 %v821_v46, %v657_v58 }
 0x15c   :  { %v446_v38 = vmul.f32 %v1878_v7, %v394_v21 }
 0x15d   :  { %v885_v30 = vmax.f32 %v853_v1, 0.0  ;;  %v734_v1 = vpop.permute.xlu0 %733 }
 0x15e   :  { %v478_v40 = vadd.f32 %v446_v38, %v2430_v12  ;;  %v825_v33 = vmul.f32 %v1976_v36, %v734_v1 }
 0x15f   :  { %1288 = vmatmul.mubr.f32.gmra.mxu0 %v885_v30  ;;  %v2433_v30 = vld [vmem:[#allocation12_spill] sm:$0xff] }
 0x160   :  { %v778_v60 = vpop.permute.xlu1 %777  ;;  %1290 = vmatprep.mubr.f32.mxu0 %v886_v47 }
 0x161   :  { %v836_v48 = vmul.f32 %v1976_v36, %v778_v60 }
 0x163   :  { %v868_v54 = vadd.f32 %v836_v48, %v672_v42 }
 0x165   :  { %v900_v49 = vmax.f32 %v868_v54, 0.0  ;;  %v398_v28 = vpop.permute.xlu1 %397  ;;  %v2434_v54 = vld [vmem:[#allocation7_spill] sm:$0xff] }
 0x166   :  { %v447_v0 = vmul.f32 %v1878_v7, %v398_v28 }
 0x167   :  { %1311 = vmatprep.mubr.f32.mxu1 %v900_v49 }
 0x168   :  { %v479_v6 = vadd.f32 %v447_v0, %v2427_v15 }
 0x16a   :  { %v782_v23 = vpop.permute.xlu1 %781  ;;  %v675_v9 = vadd.f32 %v643_v29, %v479_v6 }
 0x16b   :  { %v837_v24 = vmul.f32 %v1976_v36, %v782_v23  ;;  %v647_v23 = vmul.f32 %v1968_v2, %v2063_v44 }
 0x16d   :  { %v869_v34 = vadd.f32 %v837_v24, %v673_v57 }
 0x16f   :  { %v901_v5 = vmax.f32 %v869_v34, 0.0  ;;  %v590_v10 = vpop.permute.xlu1 %589 }
 0x170   :  { %v642_v37 = vmul.f32 %v1968_v2, %v590_v10 }
 0x171   :  { %1312 = vmatmul.mubr.f32.gmra.mxu1 %v901_v5 }
 0x172   :  { %v674_v32 = vadd.f32 %v642_v37, %v478_v40 }
 0x173   :  { %v530_v27 = vpop.permute.xlu1 %529 }
 0x174   :  { %v627_v20 = vmul.f32 %v1968_v2, %v530_v27  ;;  %v802_v27 = vpop.permute.xlu0 %801 }
 0x175   :  { %v842_v59 = vmul.f32 %v1976_v36, %v802_v27 }
 0x176   :  { %v659_v62 = vadd.f32 %v627_v20, %v2428_v50  ;;  %v2436_v50 = vld [vmem:[#allocation9_spill] sm:$0xff] }
 0x178   :  { %v402_v25 = vpop.permute.xlu1 %401  ;;  %v855_v3 = vadd.f32 %v823_v41, %v659_v62 }
 0x179   :  { %v448_v11 = vmul.f32 %v1878_v7, %v402_v25 }
 0x17a   :  { %v887_v61 = vmax.f32 %v855_v3, 0.0 }
 0x17b   :  { %v480_v49 = vadd.f32 %v448_v11, %v2434_v54 }
 0x17c   :  { %1291 = vmatmul.mubr.f32.gmra.mxu0 %v887_v61 }
 0x17d   :  { %v786_v17 = vpop.permute.xlu1 %785  ;;  %1293 = vmatprep.mubr.f32.mxu0 %v888_v31  ;;  %v2437_v31 = vld [vmem:[#allocation20_spill] sm:$0xff] }
 0x17e   :  { %v838_v57 = vmul.f32 %v1976_v36, %v786_v17  ;;  %v2438_v17 = vld [vmem:[#allocation13_spill] sm:$0xff] }
 0x180   :  { %v870_v63 = vadd.f32 %v838_v57, %v674_v32 }
 0x182   :  { %v902_v14 = vmax.f32 %v870_v63, 0.0  ;;  %v406_v18 = vpop.permute.xlu1 %405 }
 0x183   :  { %v449_v51 = vmul.f32 %v1878_v7, %v406_v18 }
 0x184   :  { %1314 = vmatprep.mubr.f32.mxu1 %v902_v14 }
 0x185   :  { %v481_v39 = vadd.f32 %v449_v51, %v2432_v45 }
 0x187   :  { %v790_v43 = vpop.permute.xlu1 %789  ;;  %v677_v46 = vadd.f32 %v645_v4, %v481_v39 }
 0x188   :  { %v839_v16 = vmul.f32 %v1976_v36, %v790_v43 }
 0x18a   :  { %v871_v8 = vadd.f32 %v839_v16, %v675_v9  ;;  %v2435_v9 = vld [vmem:[#allocation8_spill] sm:$0xff] }
 0x18c   :  { %v903_v58 = vmax.f32 %v871_v8, 0.0  ;;  %v598_v56 = vpop.permute.xlu1 %597 }
 0x18d   :  { %v644_v42 = vmul.f32 %v1968_v2, %v598_v56 }
 0x18e   :  { %1315 = vmatmul.mubr.f32.gmra.mxu1 %v903_v58 }
 0x18f   :  { %v676_v0 = vadd.f32 %v644_v42, %v480_v49 }
 0x190   :  { %v538_v19 = vpop.permute.xlu1 %537 }
 0x191   :  { %v629_v21 = vmul.f32 %v1968_v2, %v538_v19 }
 0x193   :  { %v661_v47 = vadd.f32 %v629_v21, %v2433_v30 }
 0x195   :  { %v410_v55 = vpop.permute.xlu1 %409  ;;  %v857_v60 = vadd.f32 %v825_v33, %v661_v47 }
 0x196   :  { %v450_v26 = vmul.f32 %v1878_v7, %v410_v55 }
 0x197   :  { %v889_v48 = vmax.f32 %v857_v60, 0.0 }
 0x198   :  { %v482_v62 = vadd.f32 %v450_v26, %v2436_v50 }
 0x199   :  { %1294 = vmatmul.mubr.f32.gmra.mxu0 %v889_v48 }
 0x19a   :  { %v794_v28 = vpop.permute.xlu1 %793 }
 0x19b   :  { %v840_v35 = vmul.f32 %v1976_v36, %v794_v28 }
 0x19d   :  { %v872_v29 = vadd.f32 %v840_v35, %v676_v0 }
 0x19f   :  { %v904_v15 = vmax.f32 %v872_v29, 0.0  ;;  %v414_v6 = vpop.permute.xlu1 %413 }
 0x1a0   :  { %v451_v53 = vmul.f32 %v1878_v7, %v414_v6 }
 0x1a1   :  { %1317 = vmatprep.mubr.f32.mxu1 %v904_v15 }
 0x1a2   :  { %v483_v24 = vadd.f32 %v451_v53, %v2435_v9 }
 0x1a4   :  { %v798_v34 = vpop.permute.xlu1 %797  ;;  %v679_v5 = vadd.f32 %v647_v23, %v483_v24 }
 0x1a5   :  { %v841_v10 = vmul.f32 %v1976_v36, %v798_v34 }
 0x1a7   :  { %v873_v52 = vadd.f32 %v841_v10, %v677_v46 }
 0x1a9   :  { %v905_v41 = vmax.f32 %v873_v52, 0.0  ;;  %v606_v20 = vpop.permute.xlu1 %605 }
 0x1aa   :  { %v646_v13 = vmul.f32 %v1968_v2, %v606_v20 }
 0x1ab   :  { %1318 = vmatmul.mubr.f32.gmra.mxu1 %v905_v41 }
 0x1ac   :  { %v678_v44 = vadd.f32 %v646_v13, %v482_v62 }
 0x1ad   :  { %v546_v38 = vpop.permute.xlu1 %545 }
 0x1ae   :  { %v874_v25 = vadd.f32 %v842_v59, %v678_v44  ;;  %v631_v61 = vmul.f32 %v1968_v2, %v546_v38  ;;  %v2224_v2 = vld [vmem:[%s2390_s4] ss:$0 sm:$0xff] }
 0x1b0   :  { %v906_v3 = vmax.f32 %v874_v25, 0.0  ;;  %v663_v32 = vadd.f32 %v631_v61, %v2438_v17 }
 0x1b2   :  { %v738_v37 = vpop.permute.xlu1 %737  ;;  %1320 = vmatprep.mubr.f32.mxu1 %v906_v3 }
 0x1b3   :  { %v826_v7 = vmul.f32 %v1976_v36, %v738_v37 }
 0x1b5   :  { %v858_v12 = vadd.f32 %v826_v7, %v2437_v31 }
 0x1b6   :  { %v742_v40 = vpop.permute.xlu1 %741 }
 0x1b7   :  { %v890_v57 = vmax.f32 %v858_v12, 0.0  ;;  %v827_v63 = vmul.f32 %v1976_v36, %v742_v40 }
 0x1b9   :  { %v859_v14 = vadd.f32 %v827_v63, %v663_v32  ;;  %1296 = vmatprep.mubr.f32.mxu0 %v890_v57 }
 0x1ba   :  { %v806_v18 = vpop.permute.xlu1 %805 }
 0x1bb   :  { %v891_v51 = vmax.f32 %v859_v14, 0.0  ;;  %v843_v22 = vmul.f32 %v1976_v36, %v806_v18 }
 0x1bd   :  { %v875_v4 = vadd.f32 %v843_v22, %v679_v5  ;;  %1297 = vmatmul.mubr.f32.gmra.mxu0 %v891_v51 }
 0x1bf   :  { %v907_v45 = vmax.f32 %v875_v4, 0.0 }
 0x1c1   :  { %1321 = vmatmul.mubr.f32.gmra.mxu1 %v907_v45 }
 0x1ec   :  { %v1277_v39 = vpop.f32.mrf.mxu0 }
 0x1ed   :  { %v1003_v43 = vadd.f32 %v1277_v39, %v2224_v2 }
 0x1ee   :  { %v997_v46 = vpop.f32.mrf.mxu0 }
 0x1ef   :  { %1158 = vst.msk [vmem:[%s2391_s5 + $0x8] sm:$0xff] %vm1156_vm0, %v1003_v43  ;;  %v998_v36 = vadd.f32 %v2224_v2, %v997_v46  ;;  %v1301_v16 = vpop.f32.mrf.mxu1 }
 0x1f0   :  { %v1083_v8 = vadd.f32 %v1301_v16, %v2224_v2 }
 0x1f1   :  { %1157 = vst.msk [vmem:[%s2391_s5] sm:$0xff] %vm1156_vm0, %v998_v36  ;;  %v1077_v58 = vpop.f32.mrf.mxu1 }
 0x1f2   :  { %1174 = vst.msk [vmem:[%s2391_s5 + $0x88] sm:$0xff] %vm1156_vm0, %v1083_v8  ;;  %v1078_v56 = vadd.f32 %v2224_v2, %v1077_v58 }
 0x1f4   :  { %1173 = vst.msk [vmem:[%s2391_s5 + $0x80] sm:$0xff] %vm1156_vm0, %v1078_v56  ;;  %v1280_v19 = vpop.f32.mrf.mxu0 }
 0x1f5   :  { %v1013_v21 = vadd.f32 %v1280_v19, %v2224_v2 }
 0x1f6   :  { %v1007_v1 = vpop.f32.mrf.mxu0 }
 0x1f7   :  { %1160 = vst.msk [vmem:[%s2391_s5 + $0x18] sm:$0xff] %vm1156_vm0, %v1013_v21  ;;  %v1008_v33 = vadd.f32 %v2224_v2, %v1007_v1  ;;  %v1304_v30 = vpop.f32.mrf.mxu1 }
 0x1f8   :  { %v1093_v47 = vadd.f32 %v1304_v30, %v2224_v2  ;;  %v1283_v11 = vpop.f32.mrf.mxu0 }
 0x1f9   :  { %1159 = vst.msk [vmem:[%s2391_s5 + $0x10] sm:$0xff] %vm1156_vm0, %v1008_v33  ;;  %v1023_v55 = vadd.f32 %v1283_v11, %v2224_v2  ;;  %v1087_v60 = vpop.f32.mrf.mxu1 }
 0x1fa   :  { %1176 = vst.msk [vmem:[%s2391_s5 + $0x98] sm:$0xff] %vm1156_vm0, %v1093_v47  ;;  %v1088_v42 = vadd.f32 %v2224_v2, %v1087_v60  ;;  %v1017_v48 = vpop.f32.mrf.mxu0 }
 0x1fb   :  { %1162 = vst.msk [vmem:[%s2391_s5 + $0x28] sm:$0xff] %vm1156_vm0, %v1023_v55  ;;  %v1018_v54 = vadd.f32 %v2224_v2, %v1017_v48  ;;  %v1307_v49 = vpop.f32.mrf.mxu1 }
 0x1fc   :  { %1175 = vst.msk [vmem:[%s2391_s5 + $0x90] sm:$0xff] %vm1156_vm0, %v1088_v42  ;;  %v1103_v28 = vadd.f32 %v1307_v49, %v2224_v2 }
 0x1fd   :  { %1161 = vst.msk [vmem:[%s2391_s5 + $0x20] sm:$0xff] %vm1156_vm0, %v1018_v54  ;;  %v1097_v0 = vpop.f32.mrf.mxu1 }
 0x1fe   :  { %1178 = vst.msk [vmem:[%s2391_s5 + $0xa8] sm:$0xff] %vm1156_vm0, %v1103_v28  ;;  %v1098_v35 = vadd.f32 %v2224_v2, %v1097_v0 }
 0x200   :  { %1177 = vst.msk [vmem:[%s2391_s5 + $0xa0] sm:$0xff] %vm1156_vm0, %v1098_v35 }
 0x203   :  { %v1286_v29 = vpop.f32.mrf.mxu0 }
 0x204   :  { %v1033_v15 = vadd.f32 %v1286_v29, %v2224_v2 }
 0x205   :  { %v1027_v6 = vpop.f32.mrf.mxu0 }
 0x206   :  { %1164 = vst.msk [vmem:[%s2391_s5 + $0x38] sm:$0xff] %vm1156_vm0, %v1033_v15  ;;  %v1028_v53 = vadd.f32 %v2224_v2, %v1027_v6 }
 0x208   :  { %1163 = vst.msk [vmem:[%s2391_s5 + $0x30] sm:$0xff] %vm1156_vm0, %v1028_v53 }
 0x214   :  { %v1310_v23 = vpop.f32.mrf.mxu1 }
 0x215   :  { %v1113_v9 = vadd.f32 %v1310_v23, %v2224_v2 }
 0x216   :  { %v1107_v24 = vpop.f32.mrf.mxu1 }
 0x217   :  { %1180 = vst.msk [vmem:[%s2391_s5 + $0xb8] sm:$0xff] %vm1156_vm0, %v1113_v9  ;;  %v1108_v34 = vadd.f32 %v2224_v2, %v1107_v24 }
 0x219   :  { %1179 = vst.msk [vmem:[%s2391_s5 + $0xb0] sm:$0xff] %vm1156_vm0, %v1108_v34 }
 0x21f   :  { %v1289_v5 = vpop.f32.mrf.mxu0 }
 0x220   :  { %v1043_v10 = vadd.f32 %v1289_v5, %v2224_v2 }
 0x221   :  { %v1037_v26 = vpop.f32.mrf.mxu0 }
 0x222   :  { %1166 = vst.msk [vmem:[%s2391_s5 + $0x48] sm:$0xff] %vm1156_vm0, %v1043_v10  ;;  %v1038_v52 = vadd.f32 %v2224_v2, %v1037_v26 }
 0x224   :  { %1165 = vst.msk [vmem:[%s2391_s5 + $0x40] sm:$0xff] %vm1156_vm0, %v1038_v52 }
 0x231   :  { %v1313_v27 = vpop.f32.mrf.mxu1 }
 0x232   :  { %v1123_v41 = vadd.f32 %v1313_v27, %v2224_v2 }
 0x233   :  { %v1117_v20 = vpop.f32.mrf.mxu1 }
 0x234   :  { %1182 = vst.msk [vmem:[%s2391_s5 + $0xc8] sm:$0xff] %vm1156_vm0, %v1123_v41  ;;  %v1118_v50 = vadd.f32 %v2224_v2, %v1117_v20 }
 0x236   :  { %1181 = vst.msk [vmem:[%s2391_s5 + $0xc0] sm:$0xff] %vm1156_vm0, %v1118_v50 }
 0x23c   :  { %v1292_v62 = vpop.f32.mrf.mxu0 }
 0x23d   :  { %v1053_v13 = vadd.f32 %v1292_v62, %v2224_v2 }
 0x23e   :  { %v1047_v59 = vpop.f32.mrf.mxu0 }
 0x23f   :  { %1168 = vst.msk [vmem:[%s2391_s5 + $0x58] sm:$0xff] %vm1156_vm0, %v1053_v13  ;;  %v1048_v44 = vadd.f32 %v2224_v2, %v1047_v59 }
 0x241   :  { %1167 = vst.msk [vmem:[%s2391_s5 + $0x50] sm:$0xff] %vm1156_vm0, %v1048_v44 }
 0x24e   :  { %v1316_v38 = vpop.f32.mrf.mxu1 }
 0x24f   :  { %v1133_v25 = vadd.f32 %v1316_v38, %v2224_v2 }
 0x250   :  { %v1127_v3 = vpop.f32.mrf.mxu1 }
 0x251   :  { %1184 = vst.msk [vmem:[%s2391_s5 + $0xd8] sm:$0xff] %vm1156_vm0, %v1133_v25  ;;  %v1128_v37 = vadd.f32 %v2224_v2, %v1127_v3 }
 0x253   :  { %1183 = vst.msk [vmem:[%s2391_s5 + $0xd0] sm:$0xff] %vm1156_vm0, %v1128_v37 }
 0x259   :  { %v1295_v61 = vpop.f32.mrf.mxu0 }
 0x25a   :  { %v1063_v7 = vadd.f32 %v1295_v61, %v2224_v2 }
 0x25b   :  { %v1057_v31 = vpop.f32.mrf.mxu0 }
 0x25c   :  { %1170 = vst.msk [vmem:[%s2391_s5 + $0x68] sm:$0xff] %vm1156_vm0, %v1063_v7  ;;  %v1058_v12 = vadd.f32 %v2224_v2, %v1057_v31 }
 0x25e   :  { %1169 = vst.msk [vmem:[%s2391_s5 + $0x60] sm:$0xff] %vm1156_vm0, %v1058_v12 }
 0x26b   :  { %v1319_v40 = vpop.f32.mrf.mxu1 }
 0x26c   :  { %v1143_v17 = vadd.f32 %v1319_v40, %v2224_v2 }
 0x26d   :  { %v1137_v32 = vpop.f32.mrf.mxu1 }
 0x26e   :  { %1186 = vst.msk [vmem:[%s2391_s5 + $0xe8] sm:$0xff] %vm1156_vm0, %v1143_v17  ;;  %v1138_v57 = vadd.f32 %v2224_v2, %v1137_v32 }
 0x270   :  { %1185 = vst.msk [vmem:[%s2391_s5 + $0xe0] sm:$0xff] %vm1156_vm0, %v1138_v57 }
 0x27d   :  { %v1298_v63 = vpop.f32.mrf.mxu0 }
 0x27e   :  { %v1073_v14 = vadd.f32 %v1298_v63, %v2224_v2 }
 0x27f   :  { %v1067_v18 = vpop.f32.mrf.mxu0 }
 0x280   :  { %1172 = vst.msk [vmem:[%s2391_s5 + $0x78] sm:$0xff] %vm1156_vm0, %v1073_v14  ;;  %v1068_v51 = vadd.f32 %v2224_v2, %v1067_v18 }
 0x281   :  { %v1322_v22 = vpop.f32.mrf.mxu1 }
 0x282   :  { %1171 = vst.msk [vmem:[%s2391_s5 + $0x70] sm:$0xff] %vm1156_vm0, %v1068_v51  ;;  %v1153_v4 = vadd.f32 %v1322_v22, %v2224_v2 }
 0x283   :  { %v1147_v45 = vpop.f32.mrf.mxu1 }
 0x284   :  { %1188 = vst.msk [vmem:[%s2391_s5 + $0xf8] sm:$0xff] %vm1156_vm0, %v1153_v4  ;;  %v1148_v39 = vadd.f32 %v2224_v2, %v1147_v45 }
 0x286   :  { %1187 = vst.msk [vmem:[%s2391_s5 + $0xf0] sm:$0xff] %vm1156_vm0, %v1148_v39 }

</bundles_post_ra>
